<compile_context>
chip_gen: v6e
topology: v6e:2x2x1
jax: 0.10.0
libtpu: 0.0.40
codegen_flags: <defaults>
</compile_context>

<pallas_src>
import math

import jax
import jax.numpy as jnp
from jax.experimental import pallas as pl
from jax.experimental.pallas import tpu as pltpu


NEG_SLOPE = 0.2   # nn.LeakyReLU(0.2, True)
KSIZE = 4         # Conv2d kernel_size=4
STRIDE = 2        # Conv2d stride=2
PAD = 1           # Conv2d padding=1
BN_EPS = 1e-5


# ----------------------------------------------------------------------------
# Pallas kernel: K-tiled (im2col matmul) + folded-BN affine + LeakyReLU
# ----------------------------------------------------------------------------
def _fused_conv_bn_lrelu_kernel(w_ref, p_ref, scale_ref, bias_ref, o_ref, acc_ref):
    # w_ref:     (C_out, TK)   bf16  conv weights, K-tile
    # p_ref:     (TK, TN)      bf16  im2col patches tile (batch dim squeezed)
    # scale_ref: (C_out, 1)    f32   folded BN scale
    # bias_ref:  (C_out, 1)    f32   folded BN bias (incl. conv bias)
    # o_ref:     (C_out, TN)   f32   output tile (batch dim squeezed)
    # acc_ref:   (C_out, TN)   f32   accumulator scratch (resident across K axis)
    k = pl.program_id(2)

    @pl.when(k == 0)
    def _init():
        acc_ref[...] = jnp.zeros_like(acc_ref)

    acc_ref[...] += jnp.dot(w_ref[...], p_ref[...],
                            preferred_element_type=jnp.float32)

    @pl.when(k == pl.num_programs(2) - 1)
    def _finalize():
        y = acc_ref[...] * scale_ref[...] + bias_ref[...]
        o_ref[...] = jnp.where(y > 0.0, y, jnp.float32(NEG_SLOPE) * y).astype(o_ref.dtype)


def _choose_tile(total, candidates):
    """Largest candidate that evenly divides `total`, else the full extent."""
    for c in candidates:
        if total % c == 0:
            return c
    return total


def encoder_block_forward(x, params):
    """x: (B, C_in, H, W) NCHW -> (B, C_out, H//2, W//2) NCHW, float32."""
    B, C_in, H, W = x.shape
    w = params["w"]                                   # (C_out, C_in, K, K)
    C_out = w.shape[0]
    Ho = (H + 2 * PAD - KSIZE) // STRIDE + 1
    Wo = (W + 2 * PAD - KSIZE) // STRIDE + 1
    Nsp = Ho * Wo                                     # lane axis per batch sample
    Ktot = C_in * KSIZE * KSIZE                       # contraction axis

    # ---- one-time layout plumbing in XLA: pad + im2col (bf16), per-batch lane slab ----
    xp = jnp.pad(x, ((0, 0), (0, 0), (PAD, PAD), (PAD, PAD)))
    cols = []
    for kh in range(KSIZE):
        for kw in range(KSIZE):
            cols.append(xp[:, :, kh:kh + STRIDE * Ho:STRIDE,
                               kw:kw + STRIDE * Wo:STRIDE])       # (B, C_in, Ho, Wo)
    patches = jnp.stack(cols, axis=2)                 # (B, C_in, K*K, Ho, Wo)
    patches = patches.reshape(B, Ktot, Nsp).astype(jnp.bfloat16)  # rows: ci*16 + kh*4 + kw
    w2d = w.reshape(C_out, Ktot).astype(jnp.bfloat16)             # same inner order

    # Tile sizes: lane tile multiple of 128 (or full extent for the toy 8x8 case);
    # K tile multiple of 128 (or full). Capped so double-buffered tiles stay small.
    TN = _choose_tile(Nsp, (1024, 512, 256, 128))
    TK = _choose_tile(Ktot, (512, 256, 128))
    grid = (B, Nsp // TN, Ktot // TK)                 # K (reduction) is the last axis

    out3d = pl.pallas_call(
        _fused_conv_bn_lrelu_kernel,
        out_shape=jax.ShapeDtypeStruct((B, C_out, Nsp), jnp.float32),
        grid_spec=pltpu.PrefetchScalarGridSpec(
            num_scalar_prefetch=0,
            grid=grid,
            in_specs=[
                pl.BlockSpec((C_out, TK), lambda b, n, k: (0, k)),        # weights
                pl.BlockSpec((None, TK, TN), lambda b, n, k: (b, k, n)),  # patches
                pl.BlockSpec((C_out, 1), lambda b, n, k: (0, 0)),         # scale
                pl.BlockSpec((C_out, 1), lambda b, n, k: (0, 0)),         # bias
            ],
            out_specs=pl.BlockSpec((None, C_out, TN), lambda b, n, k: (b, 0, n)),
            scratch_shapes=[pltpu.VMEM((C_out, TN), jnp.float32)],
        ),
        compiler_params=pltpu.CompilerParams(
            dimension_semantics=("parallel", "parallel", "arbitrary"),
            vmem_limit_bytes=32 * 1024 * 1024,
        ),
    )(w2d, patches, params["scale"], params["bias"])

    # (B, C_out, Ho*Wo) -> (B, C_out, Ho, Wo): contiguous reshape only (no transpose).
    return out3d.reshape(B, C_out, Ho, Wo)


# ----------------------------------------------------------------------------
# Parameter construction (deterministic, synthetic) + eval-mode BN fold
# ----------------------------------------------------------------------------
def init_encoder_block_params(key, c_in, c_out, *, bias=True):
    kw, kb, kg, kbt = jax.random.split(key, 4)
    fan = float(c_in * KSIZE * KSIZE)
    w = jax.random.normal(kw, (c_out, c_in, KSIZE, KSIZE), jnp.float32) / math.sqrt(fan)
    conv_b = (0.1 * jax.random.normal(kb, (c_out,), jnp.float32)
              if bias else jnp.zeros((c_out,), jnp.float32))
    gamma = 1.0 + 0.1 * jax.random.normal(kg, (c_out,), jnp.float32)
    beta = 0.1 * jax.random.normal(kbt, (c_out,), jnp.float32)
    # eval-mode BN (running_mean=0, running_var=1) folded with the conv bias:
    #   y = gamma/sqrt(1+eps) * (conv + conv_b) + beta = scale*conv + bias
    scale = gamma / jnp.sqrt(1.0 + BN_EPS)
    fbias = scale * conv_b + beta
    return {
        "w": w,
        "conv_b": conv_b, "gamma": gamma, "beta": beta,   # kept for the reference
        "scale": scale.reshape(c_out, 1),
        "bias": fbias.reshape(c_out, 1),
    }


# ----------------------------------------------------------------------------
# Pure-JAX reference (same semantics, bf16-rounded matmul operands, f32 accumulate)
# ----------------------------------------------------------------------------
def encoder_block_ref(x, params):
    xb = x.astype(jnp.bfloat16).astype(jnp.float32)
    wb = params["w"].astype(jnp.bfloat16).astype(jnp.float32)
    y = jax.lax.conv_general_dilated(
        xb, wb,
        window_strides=(STRIDE, STRIDE),
        padding=((PAD, PAD), (PAD, PAD)),
        dimension_numbers=("NCHW", "OIHW", "NCHW"))
    y = y + params["conv_b"][None, :, None, None]
    y = (params["gamma"][None, :, None, None] * y / jnp.sqrt(1.0 + BN_EPS)
         + params["beta"][None, :, None, None])
    return jnp.where(y > 0, y, NEG_SLOPE * y)


# ----------------------------------------------------------------------------
if __name__ == "__main__":
    B, C_IN, H, W = 2, 4, 16, 16       # output (2, 8, 8, 8)
    C_OUT = 8

    key = jax.random.PRNGKey(0)
    k_params, k_x = jax.random.split(key)
    params = init_encoder_block_params(k_params, C_IN, C_OUT, bias=True)
    x = jax.random.normal(k_x, (B, C_IN, H, W), jnp.float32)

    out = jax.block_until_ready(encoder_block_forward(x, params))

    assert out.shape == (B, C_OUT, H // 2, W // 2), out.shape
    assert bool(jnp.all(jnp.isfinite(out)))

    ref = jax.block_until_ready(encoder_block_ref(x, params))
    max_err = float(jnp.max(jnp.abs(out - ref)))
    assert bool(jnp.allclose(out, ref, rtol=2e-3, atol=2e-3)), max_err

    print("KERNEL_OK")
</pallas_src>

<mosaic_0001>
module attributes {stable_mosaic.version = 11 : i64} {
  func.func @_fused_conv_bn_lrelu_kernel(%arg0: i32, %arg1: i32, %arg2: i32, %arg3: memref<8x64xbf16, #tpu.memory_space<vmem>>, %arg4: memref<1x64x64xbf16, #tpu.memory_space<vmem>>, %arg5: memref<8x1xf32, #tpu.memory_space<vmem>>, %arg6: memref<8x1xf32, #tpu.memory_space<vmem>>, %arg7: memref<1x8x64xf32, #tpu.memory_space<vmem>>, %arg8: memref<8x64xf32, #tpu.memory_space<vmem>>) attributes {dimension_semantics = [#tpu.dimension_semantics<parallel>, #tpu.dimension_semantics<parallel>, #tpu.dimension_semantics<arbitrary>], iteration_bounds = array<i64: 2, 1, 1>, scalar_prefetch = 0 : i64, scratch_operands = 1 : i64, tpu.core_type = #tpu.core_type<tc>, window_params = [{transform_indices = @transform_0, window_bounds = array<i64: 8, 64>}, {transform_indices = @transform_1, window_bounds = array<i64: 1, 64, 64>}, {pipeline_mode = #tpu.pipeline_mode<synchronous>, transform_indices = @transform_2, window_bounds = array<i64: 8, 1>}, {pipeline_mode = #tpu.pipeline_mode<synchronous>, transform_indices = @transform_3, window_bounds = array<i64: 8, 1>}, {transform_indices = @transform_4, window_bounds = array<i64: 1, 8, 64>}]} {
    %c0_i32 = arith.constant 0 : i32
    %0 = arith.cmpi eq, %arg2, %c0_i32 : i32
    %1 = arith.extui %0 : i1 to i32
    %c0_i32_0 = arith.constant 0 : i32
    %2 = arith.cmpi ne, %1, %c0_i32_0 : i32
    scf.if %2 {
      %cst_11 = arith.constant 0.000000e+00 : f32
      %13 = vector.broadcast %cst_11 : f32 to vector<8x64xf32>
      %c0_12 = arith.constant 0 : index
      %c0_13 = arith.constant 0 : index
      %14 = vector.load %arg8[%c0_12, %c0_13] : memref<8x64xf32, #tpu.memory_space<vmem>>, vector<8x64xf32>
      tpu.vector_store %arg8[%c0_12, %c0_13], %13 {strides = array<i32>} : memref<8x64xf32, #tpu.memory_space<vmem>>, vector<8x64xf32>,
    } else {
    }
    %c0 = arith.constant 0 : index
    %c0_1 = arith.constant 0 : index
    %3 = vector.load %arg8[%c0, %c0_1] : memref<8x64xf32, #tpu.memory_space<vmem>>, vector<8x64xf32>
    %c0_2 = arith.constant 0 : index
    %c0_3 = arith.constant 0 : index
    %4 = vector.load %arg3[%c0_2, %c0_3] : memref<8x64xbf16, #tpu.memory_space<vmem>>, vector<8x64xbf16>
    %c0_4 = arith.constant 0 : index
    %c0_5 = arith.constant 0 : index
    %c0_6 = arith.constant 0 : index
    %5 = vector.load %arg4[%c0_4, %c0_5, %c0_6] : memref<1x64x64xbf16, #tpu.memory_space<vmem>>, vector<1x64x64xbf16>
    %6 = vector.shape_cast %5 : vector<1x64x64xbf16> to vector<64x64xbf16>
    %cst = arith.constant dense<0.000000e+00> : vector<8x64xf32>
    %7 = tpu.matmul %4, %6, %cst {dimension_numbers = #tpu.dot_dimension_numbers<[1], [0], [0], [1], [0, 0, 1, 1], [], []>} : vector<8x64xbf16>, vector<64x64xbf16>, vector<8x64xf32> -> vector<8x64xf32>
    %8 = arith.addf %3, %7 : vector<8x64xf32>
    %c0_7 = arith.constant 0 : index
    %c0_8 = arith.constant 0 : index
    %9 = vector.load %arg8[%c0_7, %c0_8] : memref<8x64xf32, #tpu.memory_space<vmem>>, vector<8x64xf32>
    tpu.vector_store %arg8[%c0_7, %c0_8], %8 {strides = array<i32>} : memref<8x64xf32, #tpu.memory_space<vmem>>, vector<8x64xf32>,
    %c0_i32_9 = arith.constant 0 : i32
    %10 = arith.cmpi eq, %arg2, %c0_i32_9 : i32
    %11 = arith.extui %10 : i1 to i32
    %c0_i32_10 = arith.constant 0 : i32
    %12 = arith.cmpi ne, %11, %c0_i32_10 : i32
    scf.if %12 {
      %c0_11 = arith.constant 0 : index
      %c0_12 = arith.constant 0 : index
      %13 = vector.load %arg8[%c0_11, %c0_12] : memref<8x64xf32, #tpu.memory_space<vmem>>, vector<8x64xf32>
      %c0_13 = arith.constant 0 : index
      %c0_14 = arith.constant 0 : index
      %14 = vector.load %arg5[%c0_13, %c0_14] : memref<8x1xf32, #tpu.memory_space<vmem>>, vector<8x1xf32>
      %15 = vector.broadcast %14 : vector<8x1xf32> to vector<8x64xf32>
      %16 = arith.mulf %13, %15 : vector<8x64xf32>
      %c0_15 = arith.constant 0 : index
      %c0_16 = arith.constant 0 : index
      %17 = vector.load %arg6[%c0_15, %c0_16] : memref<8x1xf32, #tpu.memory_space<vmem>>, vector<8x1xf32>
      %18 = vector.broadcast %17 : vector<8x1xf32> to vector<8x64xf32>
      %19 = arith.addf %16, %18 : vector<8x64xf32>
      %cst_17 = arith.constant 0.000000e+00 : f32
      %20 = vector.broadcast %cst_17 : f32 to vector<8x64xf32>
      %21 = arith.cmpf ogt, %19, %20 : vector<8x64xf32>
      %cst_18 = arith.constant 2.000000e-01 : f32
      %22 = vector.broadcast %cst_18 : f32 to vector<8x64xf32>
      %23 = arith.mulf %22, %19 : vector<8x64xf32>
      %24 = arith.select %21, %19, %23 : vector<8x64xi1>, vector<8x64xf32>
      %c0_19 = arith.constant 0 : index
      %c0_20 = arith.constant 0 : index
      %c0_21 = arith.constant 0 : index
      %25 = vector.load %arg7[%c0_19, %c0_20, %c0_21] : memref<1x8x64xf32, #tpu.memory_space<vmem>>, vector<1x8x64xf32>
      %26 = vector.shape_cast %25 : vector<1x8x64xf32> to vector<8x64xf32>
      %27 = vector.shape_cast %24 : vector<8x64xf32> to vector<1x8x64xf32>
      tpu.vector_store %arg7[%c0_19, %c0_20, %c0_21], %27 {strides = array<i32>} : memref<1x8x64xf32, #tpu.memory_space<vmem>>, vector<1x8x64xf32>,
    } else {
    }
    return
  }
  func.func @transform_0(%arg0: i32, %arg1: i32, %arg2: i32) -> (i32, i32) {
    %c0_i32 = arith.constant 0 : i32
    %c0_i32_0 = arith.constant 0 : i32
    return %c0_i32, %arg2 : i32, i32
  }
  func.func @transform_1(%arg0: i32, %arg1: i32, %arg2: i32) -> (i32, i32, i32) {
    %c0_i32 = arith.constant 0 : i32
    return %arg0, %arg2, %arg1 : i32, i32, i32
  }
  func.func @transform_2(%arg0: i32, %arg1: i32, %arg2: i32) -> (i32, i32) {
    %c0_i32 = arith.constant 0 : i32
    %c0_i32_0 = arith.constant 0 : i32
    %c0_i32_1 = arith.constant 0 : i32
    return %c0_i32, %c0_i32_0 : i32, i32
  }
  func.func @transform_3(%arg0: i32, %arg1: i32, %arg2: i32) -> (i32, i32) {
    %c0_i32 = arith.constant 0 : i32
    %c0_i32_0 = arith.constant 0 : i32
    %c0_i32_1 = arith.constant 0 : i32
    return %c0_i32, %c0_i32_0 : i32, i32
  }
  func.func @transform_4(%arg0: i32, %arg1: i32, %arg2: i32) -> (i32, i32, i32) {
    %c0_i32 = arith.constant 0 : i32
    %c0_i32_0 = arith.constant 0 : i32
    return %arg0, %c0_i32, %arg1 : i32, i32, i32
  }
}

</mosaic_0001>

<bundles_post_ra>
// kernel: tpu_custom_call.1
= control target key start
LH: loop header
LB: loop body
LE: loop exit
PB: predicated region body
PF: predicated region fallthrough
CT: control target
= control target key end

     0   :  { %9 = vsyncpa [#allocation4], 0  ;;  %s891_s0 = inlined_call_operand.vmem [shape: bf16[8,64], index: 0, kind: input, shape index: {}]   ;;  %s892_s1 = inlined_call_operand.hbm [shape: bf16[2,64,64], index: 1, kind: input, shape index: {}]   ;;  %s893_s2 = inlined_call_operand.vmem [shape: f32[8,1], index: 2, kind: input, shape index: {}]   ;;  %s894_s3 = inlined_call_operand.vmem [shape: f32[8,1], index: 3, kind: input, shape index: {}]   ;;  %s895_s4 = inlined_call_operand.hbm [shape: f32[2,8,64], index: 4, kind: output, shape index: {}]  }
   0x1   :  { %11 = vsyncpa [#allocation4 + $0x1], 0 }
   0x2   :  { %12 = vsyncpa [#allocation5], 0 }
   0x3   :  { %14 = vsyncpa [#allocation5 + $0x1], 0  ;;  %s739_s15 = smov 0   ;;  %s741_s16 = smov 0  }
   0x4   :  { %s743_s17 = smov 0   ;;  %s745_s18 = smov 0  }
   0x5   :  { %s747_s19 = smov 0   ;;  %s749_s20 = smov 0  }
   0x6 LB: > { %s487_s21 = sadd.s32 4294967295, %s705_s20   ;;  %s488_s22 = sadd.s32 4294967294, %s705_s20   ;;  %s705_s20 = sphi %s749_s20, %s20_s20   ;;  %s701_s19 = sphi %s747_s19, %s906_s19   ;;  %s697_s18 = sphi %s745_s18, %s905_s18   ;;  %s693_s17 = sphi %s743_s17, %s904_s17   ;;  %s689_s16 = sphi %s741_s16, %s903_s16   ;;  %s685_s15 = sphi %s739_s15, %s902_s15  }
   0x7   : > { %s39_s23 = sadd.s32 1, %s701_s19  ;;  %s76_s24 = sadd.s32 1, %s693_s17 }
   0x8   : > { %p41_p0 = scmp.ge.s32.totalorder %s39_s23, 2  ;;  %p83_p1 = scmp.ne.s32.totalorder %s693_s17, %s689_s16 }
   0x9   : > { %p84_p2 = scmp.eq.s32.totalorder %s705_s20, 0  ;;  %p89_p3 = scmp.ne.s32.totalorder %s689_s16, %s685_s15 }
   0xa   : > { %s908_s23 = smov (%p41_p0, %s39_s23), 0  ;;  %p90_p5 = scmp.eq.s32.totalorder %s487_s21, 0 }
   0xb   : > { %p780_p4 = por %p84_p2, %p83_p1  ;;  %s69_s26 = ssub.s32 %s701_s19, %s908_s23 }
   0xc   : > { %p157_p6 = scmp.eq.s32.totalorder %s487_s21, 1  ;;  %p74_p7 = scmp.eq.s32.totalorder %s69_s26, 0 }
   0xd   : > { %p786_p8 = por %p90_p5, %p89_p3  ;;  %p163_p10 = scmp.eq.s32.totalorder %s488_s22, 1 }
   0xe   : > { %p790_p9 = por %p157_p6, %p83_p1  ;;  %p537_p13 = scmp.lt.s32.totalorder %s705_s20, 2 }
   0xf   : > { %s795_s29 = scalar_select %p74_p7, %s693_s17, %s76_s24  }
  0x10   : > { %p797_p11 = por %p163_p10, %p89_p3  ;;  %s196_s5 = sand.u32 1, %s693_s17  }
  0x11   : > { %s492_s6 = sshll.u32 %s196_s5, 5  ;;  %s507_s7 = sshll.u32 %s701_s19, 9 }
  0x12   : > { %s209_s10 = scalar_lea.hbm %s892_s1, %s507_s7  ;;  %s200_s11 = scalar_lea.vmem [#allocation3], %s492_s6 }
  0x13   : > { %s210_s12 = sshll.u32 %s200_s11, 4  ;;  %p810_p0 = pnand %p537_p13, %p780_p4  ;;  %s211_s12 = int_to_ptr.vmem [resolvable:$true] %s210_s12 }
  0x14   : > { %p495_p1 = scmp.ge.s32.totalorder %s705_s20, 1  ;;  %s197_s14 = scalar_lea.sflag [#allocation4], %s196_s5 }
  0x15   : > { %p599_p2 = pneg %p810_p0  ;;  %s610_s21 = scalar_lea.vmem %s211_s12, 512 }
  0x16   : > { %p611_p3 = scmp.ne.s32.totalorder %s211_s12, %s610_s21  ;;  %s707_s22 = smov [#allocation3]  }
  0x17   : > { %s615_s24 = sshll.u32 %s707_s22, 4  ;;  %s616_s24 = int_to_ptr.vmem [resolvable:$false] %s615_s24 }
  0x18   : > { %p613_p5 = pnand %p611_p3, %p599_p2  ;;  %s617_s26 = scalar_lea.vmem %s616_s24, 1024 }
  0x19   : > { %p618_p7 = scmp.lt.s32.totalorder %s211_s12, %s616_s24  ;;  %p619_p10 = scmp.lt.s32.totalorder %s617_s26, %s610_s21 }
  0x1a   : > { %p614_p6 = pneg %p613_p5 }
  0x1b   : > { %p620_p12 = por %p619_p10, %p618_p7 }
  0x1d   : > { %p621_p4 = pnand %p620_p12, %p614_p6 }
  0x1f   : > { %624 = shalt.err (!%p621_p4)
}
  0x20   : > { %s708_s25 = smov 64   ;;  %s709_s5 = smov 4  }
  0x21   : > { %532 = dma.hbm_to_vmem [thread:$0]  (!%p810_p0), %s209_s10, 512, %s211_s12, %s197_s14, %s708_s25, %s708_s25, %s709_s5  }
  0x22   : > { %p218_p13 = scmp.lt.s32.totalorder %s705_s20, 3 }
  0x24   : > { %p219_p2 = pnand %p495_p1, %p218_p13 }
  0x25   : > { %s823_s6 = sand.u32 (!%p219_p2), 1, %s689_s16  }
  0x26   : > { %222 = sbr.rel (%p219_p2) target bundleno = 284 (0x11c), region = 36  ;;  %s496_s7 = sshll.u32 (!%p219_p2), %s823_s6, 5 }
  0x27   : > { %s225_s8 = scalar_lea.sflag (!%p219_p2), [#allocation4], %s823_s6  ;;  %s228_s9 = scalar_lea.vmem (!%p219_p2), [#allocation3], %s496_s7 }
  0x2b   : > { %676 = dma.done.wait (%p786_p8), %s225_s8, 512  }
  0x2c   : > { %678 = vsyncadd (%p786_p8), %s225_s8, 4294966784  ;;  %vm267_vm0 = vcmask 523264   ;;  %v710_v0 = vmov 0.0   ;;  %vm711_vm1 = vmmov 0   ;;  %v712_v1 = vmov 0   ;;  %v593_v2 = vld [vmem:[%s228_s9 + $0x18] sm:$0xff]  }
  0x2d   : > { %513 = vmatprep.subr.bf16.mxu0 %v710_v0  ;;  %521 = vmatprep.mubr.msk.bf16.mxu0 %vm711_vm1, %v710_v0  ;;  %268 = vst.msk [vmem:[#allocation2] sm:$0xff] %vm267_vm0, %v710_v0  ;;  %v594_v3 = vld [vmem:[%s228_s9 + $0x10] sm:$0xff]   ;;  %v353_v4 = vld [vmem:[%s893_s2] sm:$0xff]  ;;  %v595_v5 = vld [vmem:[%s228_s9 + $0x8] sm:$0xff]   ;;  %s497_s21 = sshll.u32 %s823_s6, 3  ;;  %s504_s22 = sshll.u32 %s697_s18, 7 }
  0x2e   : > { %592 = vset.pattern.permute.xlu0 %v712_v1  ;;  %514 = vmatpush3.bf16.msra.mxu0 %v593_v2  ;;  %v360_v6 = vld [vmem:[%s894_s3] sm:$0xff]  ;;  %v596_v7 = vld [vmem:[%s228_s9] sm:$0xff]   ;;  %s256_s24 = scalar_lea.vmem [#allocation6], %s497_s21  ;;  %s848_s7 = scalar_lea.hbm %s895_s4, %s504_s22 }
  0x2f   : > { %515 = vmatprep.subr.bf16.mxu0 %v710_v0  ;;  %356 = vperm.xlu0 %592, %v353_v4   ;;  %v270_v8 = vld [vmem:[%s891_s0] sm:$0xf]  ;;  %s386_s26 = sshll.u32 %s256_s24, 4  ;;  %s372_s8 = scalar_lea.sflag [#allocation5], %s823_s6  ;;  %s387_s26 = int_to_ptr.vmem [resolvable:$true] %s386_s26 }
  0x30   : > { %s625_s9 = scalar_lea.vmem %s387_s26, 128  ;;  %s713_s18 = smov [#allocation6]  }
  0x31   : > { %p626_p8 = scmp.ne.s32.totalorder %s387_s26, %s625_s9  ;;  %s629_s10 = sshll.u32 %s713_s18, 4  ;;  %s630_s10 = int_to_ptr.vmem [resolvable:$false] %s629_s10 }
  0x32   : > { %516 = vmatpush3.bf16.msra.mxu0 %v594_v3  ;;  %s631_s11 = scalar_lea.vmem %s630_s10, 256  ;;  %p632_p1 = scmp.lt.s32.totalorder %s387_s26, %s630_s10 }
  0x33   : > { %517 = vmatprep.subr.bf16.mxu0 %v710_v0  ;;  %363 = vperm.xlu0 %592, %v360_v6   ;;  %p627_p12 = pnand %p626_p8, %p790_p9  ;;  %p633_p3 = scmp.lt.s32.totalorder %s631_s11, %s625_s9 }
  0x34   : > { %v269_v9 = vld [vmem:[#allocation2] sm:$0xff] }
  0x35   : > { %p628_p0 = pneg %p627_p12  ;;  %p634_p5 = por %p633_p3, %p632_p1 }
  0x36   : > { %518 = vmatpush3.bf16.msra.mxu0 %v595_v5 }
  0x37   : > { %519 = vmatprep.subr.bf16.mxu0 %v710_v0  ;;  %p635_p6 = pnand %p634_p5, %p628_p0 }
  0x3a   : > { %520 = vmatpush3.bf16.msra.mxu0 %v596_v7 }
  0x3d   : > { %522 = vmatmul.mubr.msk.bf16.vlgmr.msra.gmra.mxu0 %vm267_vm0, %v270_v8 }
  0xaa   : > { %v357_v14 = vpop.permute.xlu0 %356 }
  0xae   : > { %v364_v18 = vpop.permute.xlu0 %363 }
  0xfd   : > { %v341_v10 = vpop.f32.mrf.mxu0 }
  0xfe   : > { %v347_v11 = vadd.f32 %v341_v10, %v269_v9 }
  0xff   : > { %v523_v12 = vpop.f32.mrf.mxu0 }
 0x100   : > { %348 = vst.msk [vmem:[#allocation2] sm:$0xff] %vm267_vm0, %v347_v11 }
 0x101   : > { %v344_v13 = vpop.f32.mrf.mxu0 }
 0x103   : > { %v524_v15 = vpop.f32.mrf.mxu0 }
 0x107   : > { %v352_v16 = vld [vmem:[#allocation2] sm:$0xff] }
 0x108   : > { %v359_v17 = vmul.f32 %v357_v14, %v352_v16 }
 0x10a   : > { %v366_v19 = vadd.f32 %v364_v18, %v359_v17 }
 0x10c   : > { %vm367_vm2 = vcmp.gt.f32.partialorder %v366_v19, 0.0  ;;  %v368_v20 = vmul.f32 0.2, %v366_v19 }
 0x10e   : > { %v369_v21 = vsel %vm367_vm2, %v366_v19, %v368_v20 }
 0x10f   : > { %370 = vst.msk [vmem:[%s256_s24] sm:$0xff] %vm267_vm0, %v369_v21 }
 0x110   : > { %638 = shalt.err (!%p635_p6)
}
 0x111   : > { %s639_s27 = scalar_lea.hbm %s848_s7, 128  ;;  %s643_s13 = scalar_lea.hbm %s895_s4, 256 }
 0x112   : > { %p640_p7 = scmp.ne.s32.totalorder %s848_s7, %s639_s27  ;;  %p644_p13 = scmp.lt.s32.totalorder %s848_s7, %s895_s4 }
 0x113   : > { %p645_p2 = scmp.lt.s32.totalorder %s643_s13, %s639_s27 }
 0x114   : > { %p641_p10 = pnand %p640_p7, %p790_p9 }
 0x115   : > { %p646_p8 = por %p645_p2, %p644_p13 }
 0x116   : > { %p642_p4 = pneg %p641_p10 }
 0x118   : > { %p647_p12 = pnand %p646_p8, %p642_p4 }
 0x11a   : > { %650 = shalt.err (!%p647_p12)
}
 0x11b   : > { %527 = dma.vmem_to_hbm [thread:$0]  (%p790_p9), %s387_s26, 128, %s848_s7, %s372_s8  }
 0x11c PF: > { %s398_s22 = sand.u32 1, %s685_s15   ;;  %p901_p0 = scmp.ge.s32.totalorder %s705_s20, 2 }
 0x11d   : > { %s399_s24 = scalar_lea.sflag [#allocation5], %s398_s22 }
 0x11e   : > { %p534_p1 = pnand %p901_p0, %p797_p11 }
 0x120   : > { %p535_p3 = pneg %p534_p1 }
 0x122   : > { %680 = dma.done.wait (%p535_p3), %s399_s24, 128  }
 0x123   : > { %682 = vsyncadd (%p535_p3), %s399_s24, 4294967168  ;;  %s20_s20 = sadd.s32 1, %s705_s20   ;;  %s902_s15 = smov %s689_s16 }
 0x124   : > { %p17_p5 = scmp.ge.s32.totalorder %s20_s20, 4   ;;  %s903_s16 = smov %s693_s17 }
 0x125   : > { %s904_s17 = smov %s795_s29  ;;  %s905_s18 = smov %s701_s19 }
 0x126   : > { %s906_s19 = smov %s908_s23  ;;  %19 = sbr.rel (!%p17_p5) target bundleno = 6 (0x6), region = 92 }
 0x12b   :  { %404 = vsyncpa [#allocation4], 1 }
 0x12c   :  { %406 = vsyncpa [#allocation4 + $0x1], 1 }
 0x12d   :  { %407 = vsyncpa [#allocation5], 1 }
 0x12e   :  { %409 = vsyncpa [#allocation5 + $0x1], 1 }

</bundles_post_ra>
